<compile_context>
chip_gen: v7x
topology: tpu7x:2x2x1
jax: 0.10.0
libtpu: 0.0.40
codegen_flags: <defaults>
</compile_context>

<pallas_src>
import functools

import jax
import jax.numpy as jnp
from jax import lax
from jax.experimental import pallas as pl
from jax.experimental.pallas import tpu as pltpu


_DMA_ROW_BYTES = 16 << 10        # prefer per-row DMA output above this row size
_DMA_ROW_BYTES_PACKED = 4 << 10  # sub-32-bit dtypes: dynamic sublane slices relayout packed rows


def _vmem_budget_bytes():
    """Usable VMEM budget (bytes), generation-aware, with compiler headroom."""
    try:
        cap = int(pltpu.get_tpu_info().vmem_capacity_bytes)
    except Exception:  # info unavailable -> assume the smallest (v7x: 64 MiB)
        cap = 64 << 20
    return max(16 << 20, (cap * 3) // 4)


def _expanded_table(relative_pe, len_q, len_k, max_len, pad_front):
    """exp[e, :] = relative_pe[clip(e - pad_front - (len_q - 1), -M, M) + M, :].

    Built once by XLA in the wrapper (a single tiny gather).  Every output row
    out[q] is then the contiguous window exp[pad_front + len_q - 1 - q :][:len_k].
    """
    E = len_q + len_k - 1
    e = jnp.arange(E + pad_front, dtype=jnp.int32)
    idx = jnp.clip(e - pad_front - (len_q - 1), -max_len, max_len) + max_len
    return jnp.take(relative_pe, idx, axis=0)


# ---------------------------------------------------------------------------
# Path A: small rows — BlockSpec writeback, resident expanded table in VMEM.
# ---------------------------------------------------------------------------
def _rel_pe_copy_kernel(exp_ref, out_ref, *, len_q, len_k, tile_q):
    # exp_ref : (E, D) resident VMEM table, E = len_q + len_k - 1
    # out_ref : (tile_q, len_k, D) current output block
    E = exp_ref.shape[0]
    q0 = pl.program_id(0) * tile_q

    def body(r, carry):
        q = q0 + r
        # Clamp keeps reads in-bounds for rows of a partial last block
        # (q >= len_q); those rows are dropped by the masked block writeback.
        start = jnp.clip(len_q - 1 - q, 0, E - len_k)
        out_ref[r] = exp_ref[pl.ds(start, len_k), :]
        return carry

    lax.fori_loop(0, tile_q, body, 0, unroll=min(tile_q, 8))


# ---------------------------------------------------------------------------
# Path B: large rows — raw-HBM output, one async DMA per output row.
# ---------------------------------------------------------------------------
def _rel_pe_dma_kernel(exp_hbm, out_hbm, stage, stage_sem, row_sems, *,
                       len_q, len_k, tile_q, n_sem):
    # exp_hbm : (E + tile_q - 1, D) expanded table, front-padded, raw HBM
    # out_hbm : (len_q, len_k, D) raw HBM output
    # stage   : (tile_q - 1 + len_k, D) VMEM staging window
    q0 = pl.program_id(0) * tile_q
    nrows = jnp.minimum(tile_q, len_q - q0)       # rows of a partial last block
    win = tile_q - 1 + len_k

    # Stage this q-tile's exp window with a single DMA.  Dynamic offset only on
    # the HBM side.  Window bytes ~ row_bytes * (1 + tile_q/len_k): negligible
    # next to the tile_q * row_bytes written out, so the exposed wait is cheap.
    stage_cp = pltpu.make_async_copy(
        exp_hbm.at[pl.ds(len_q - 1 - q0, win)], stage, stage_sem.at[0])
    stage_cp.start()
    stage_cp.wait()

    # One contiguous DMA per output row: stage[tile_q-1-r : +len_k] -> out[q].
    # All VMEM offsets are compile-time constants; only out's HBM row index is
    # dynamic.  Semaphore ring of n_sem slots, waited lazily before reuse.
    for r in range(tile_q):
        slot = r % n_sem

        @pl.when(r < nrows)                       # skip rows past len_q
        def _issue(r=r, slot=slot):
            if r >= n_sem:
                # Free this slot.  All row copies move exactly len_k*D elements,
                # so a same-shaped dummy descriptor waits for the right bytes.
                pltpu.make_async_copy(stage.at[pl.ds(0, len_k)],
                                      out_hbm.at[0], row_sems.at[slot]).wait()
            pltpu.make_async_copy(stage.at[pl.ds(tile_q - 1 - r, len_k)],
                                  out_hbm.at[q0 + r], row_sems.at[slot]).start()

    # Drain: slot s has exactly one copy in flight iff s < nrows.
    for s in range(n_sem):
        @pl.when(s < nrows)
        def _drain(s=s):
            pltpu.make_async_copy(stage.at[pl.ds(0, len_k)], out_hbm.at[0],
                                  row_sems.at[s]).wait()


# ---------------------------------------------------------------------------
# Wrapper
# ---------------------------------------------------------------------------
def relative_position_encoding(relative_pe, len_q, len_k, max_len):
    """relative_pe: (2*max_len + 1, d_model) table.
    Returns (len_q, len_k, d_model) == PyTorch RelativePositionEncoding.forward."""
    V, D = relative_pe.shape
    assert V == 2 * max_len + 1
    assert len_q >= 1 and len_k >= 1
    E = len_q + len_k - 1
    dtype = relative_pe.dtype
    itemsize = jnp.dtype(dtype).itemsize
    row_bytes = len_k * D * itemsize
    exp_bytes = E * D * itemsize
    out_bytes = len_q * row_bytes
    budget = _vmem_budget_bytes()

    dma_threshold = _DMA_ROW_BYTES if itemsize >= 4 else _DMA_ROW_BYTES_PACKED
    exp_too_big = 2 * exp_bytes + 2 * row_bytes + (4 << 20) > budget
    use_dma = (row_bytes >= dma_threshold) or exp_too_big

    cost = pl.CostEstimate(flops=0, transcendentals=0,
                           bytes_accessed=int(out_bytes + exp_bytes))

    if use_dma:
        # --- Per-row DMA output (raw HBM), staged exp window in VMEM. -------
        tile_q = max(8, min(64, pl.cdiv(4 << 20, row_bytes)))  # ~<=4 MiB / step
        tile_q = min(tile_q, len_q)
        while tile_q > 1 and (tile_q - 1 + len_k) * D * itemsize + (4 << 20) > budget:
            tile_q = max(1, tile_q // 2)
        # TODO(synk): k-tile the staging window if a single (len_k, D) row ever
        # exceeds the VMEM budget (len_k * D * itemsize > ~40 MiB).
        n_sem = min(8, tile_q)
        stage_rows = tile_q - 1 + len_k
        exp = _expanded_table(relative_pe, len_q, len_k, max_len,
                              pad_front=tile_q - 1)
        vmem_limit = min(budget,
                         max(stage_rows * D * itemsize + (8 << 20), 16 << 20))

        kernel = functools.partial(_rel_pe_dma_kernel, len_q=len_q, len_k=len_k,
                                   tile_q=tile_q, n_sem=n_sem)
        return pl.pallas_call(
            kernel,
            out_shape=jax.ShapeDtypeStruct((len_q, len_k, D), dtype),
            grid_spec=pltpu.PrefetchScalarGridSpec(
                num_scalar_prefetch=0,
                grid=(pl.cdiv(len_q, tile_q),),
                in_specs=[pl.BlockSpec(memory_space=pl.ANY)],
                out_specs=pl.BlockSpec(memory_space=pl.ANY),
                scratch_shapes=[
                    pltpu.VMEM((stage_rows, D), dtype),
                    pltpu.SemaphoreType.DMA((1,)),
                    pltpu.SemaphoreType.DMA((n_sem,)),
                ],
            ),
            compiler_params=pltpu.CompilerParams(
                dimension_semantics=("parallel",),
                vmem_limit_bytes=int(vmem_limit),
            ),
            cost_estimate=cost,
        )(exp)

    # --- Small rows: BlockSpec writeback with a resident expanded table. ----
    tile_q = max(1, min((2 << 20) // max(1, row_bytes), len_q, 512))
    if tile_q >= 8:
        tile_q -= tile_q % 8
    while tile_q > 1 and 2 * tile_q * row_bytes + 2 * exp_bytes + (4 << 20) > budget:
        tile_q = max(1, tile_q // 2)
    exp = _expanded_table(relative_pe, len_q, len_k, max_len, pad_front=0)
    needed = 2 * tile_q * row_bytes + 2 * exp_bytes
    vmem_limit = min(budget, max(needed + (4 << 20), 16 << 20))

    kernel = functools.partial(_rel_pe_copy_kernel, len_q=len_q, len_k=len_k,
                               tile_q=tile_q)
    return pl.pallas_call(
        kernel,
        out_shape=jax.ShapeDtypeStruct((len_q, len_k, D), dtype),
        grid_spec=pltpu.PrefetchScalarGridSpec(
            num_scalar_prefetch=0,
            grid=(pl.cdiv(len_q, tile_q),),
            # Expanded table: constant index -> DMA'd once, stays resident.
            in_specs=[pl.BlockSpec((E, D), lambda i: (0, 0))],
            out_specs=pl.BlockSpec((tile_q, len_k, D), lambda i: (i, 0, 0)),
        ),
        compiler_params=pltpu.CompilerParams(
            dimension_semantics=("parallel",),
            vmem_limit_bytes=int(vmem_limit),
        ),
        cost_estimate=cost,
    )(exp)


def _reference(relative_pe, len_q, len_k, max_len):
    q = jnp.arange(len_q)
    k = jnp.arange(len_k)
    dist = k[None, :] - q[:, None]
    idx = jnp.clip(dist, -max_len, max_len) + max_len
    return relative_pe[idx]


if __name__ == "__main__":
    key = jax.random.PRNGKey(0)
    k1, k2, k3 = jax.random.split(key, 3)

    def make_table(k, max_len, d_model):
        V = 2 * max_len + 1
        bound = (6.0 / (V + d_model)) ** 0.5  # xavier_uniform_
        return jax.random.uniform(k, (V, d_model), dtype=jnp.float32,
                                  minval=-bound, maxval=bound)

    # Case 1: the module's small demo config (copy path, single block).
    pe1 = make_table(k1, 8, 32)
    out1 = jax.block_until_ready(relative_position_encoding(pe1, 8, 8, 8))
    assert out1.shape == (8, 8, 32)
    assert jnp.allclose(out1, _reference(pe1, 8, 8, 8)), "case 1 mismatch"

    # Case 2: clipping + multi-step grid + partial last q-block (copy path).
    pe2 = make_table(k2, 4, 32)
    out2 = jax.block_until_ready(relative_position_encoding(pe2, 20, 12, 4))
    assert out2.shape == (20, 12, 32)
    assert jnp.allclose(out2, _reference(pe2, 20, 12, 4)), "case 2 mismatch"

    # Case 3: rows >= 16 KiB -> per-row-DMA path, incl. a partial last q-tile.
    pe3 = make_table(k3, 16, 128)
    out3 = jax.block_until_ready(relative_position_encoding(pe3, 70, 64, 16))
    assert out3.shape == (70, 64, 128)
    assert jnp.allclose(out3, _reference(pe3, 70, 64, 16)), "case 3 mismatch"

    print("KERNEL_OK")
</pallas_src>

<mosaic_0001>
module attributes {stable_mosaic.version = 11 : i64} {
  func.func @_rel_pe_copy_kernel(%arg0: i32, %arg1: memref<15x32xf32, #tpu.memory_space<vmem>>, %arg2: memref<8x8x32xf32, #tpu.memory_space<vmem>>) attributes {dimension_semantics = [#tpu.dimension_semantics<parallel>], iteration_bounds = array<i64: 1>, scalar_prefetch = 0 : i64, scratch_operands = 0 : i64, tpu.core_type = #tpu.core_type<tc>, window_params = [{pipeline_mode = #tpu.pipeline_mode<synchronous>, transform_indices = @transform_0, window_bounds = array<i64: 15, 32>}, {transform_indices = @transform_1, window_bounds = array<i64: 8, 8, 32>}]} {
    %c8_i32 = arith.constant 8 : i32
    %0 = arith.muli %arg0, %c8_i32 : i32
    %c0_i32 = arith.constant 0 : i32
    %1 = arith.addi %0, %c0_i32 : i32
    %c7_i32 = arith.constant 7 : i32
    %2 = arith.subi %c7_i32, %1 : i32
    %c0_i32_0 = arith.constant 0 : i32
    %c7_i32_1 = arith.constant 7 : i32
    %3 = arith.maxsi %c0_i32_0, %2 : i32
    %4 = arith.minsi %c7_i32_1, %3 : i32
    %5 = arith.index_cast %4 : i32 to index
    %c0 = arith.constant 0 : index
    %6 = vector.load %arg1[%5, %c0] : memref<15x32xf32, #tpu.memory_space<vmem>>, vector<8x32xf32>
    %7 = arith.index_cast %c0_i32 : i32 to index
    %c0_2 = arith.constant 0 : index
    %c0_3 = arith.constant 0 : index
    %8 = vector.load %arg2[%7, %c0_2, %c0_3] : memref<8x8x32xf32, #tpu.memory_space<vmem>>, vector<1x8x32xf32>
    %9 = vector.shape_cast %8 : vector<1x8x32xf32> to vector<8x32xf32>
    %10 = vector.shape_cast %6 : vector<8x32xf32> to vector<1x8x32xf32>
    tpu.vector_store %arg2[%7, %c0_2, %c0_3], %10 {strides = array<i32>} : memref<8x8x32xf32, #tpu.memory_space<vmem>>, vector<1x8x32xf32>,
    %c1_i32 = arith.constant 1 : i32
    %11 = arith.addi %0, %c1_i32 : i32
    %c7_i32_4 = arith.constant 7 : i32
    %12 = arith.subi %c7_i32_4, %11 : i32
    %c0_i32_5 = arith.constant 0 : i32
    %c7_i32_6 = arith.constant 7 : i32
    %13 = arith.maxsi %c0_i32_5, %12 : i32
    %14 = arith.minsi %c7_i32_6, %13 : i32
    %15 = arith.index_cast %14 : i32 to index
    %c0_7 = arith.constant 0 : index
    %16 = vector.load %arg1[%15, %c0_7] : memref<15x32xf32, #tpu.memory_space<vmem>>, vector<8x32xf32>
    %17 = arith.index_cast %c1_i32 : i32 to index
    %c0_8 = arith.constant 0 : index
    %c0_9 = arith.constant 0 : index
    %18 = vector.load %arg2[%17, %c0_8, %c0_9] : memref<8x8x32xf32, #tpu.memory_space<vmem>>, vector<1x8x32xf32>
    %19 = vector.shape_cast %18 : vector<1x8x32xf32> to vector<8x32xf32>
    %20 = vector.shape_cast %16 : vector<8x32xf32> to vector<1x8x32xf32>
    tpu.vector_store %arg2[%17, %c0_8, %c0_9], %20 {strides = array<i32>} : memref<8x8x32xf32, #tpu.memory_space<vmem>>, vector<1x8x32xf32>,
    %c2_i32 = arith.constant 2 : i32
    %21 = arith.addi %0, %c2_i32 : i32
    %c7_i32_10 = arith.constant 7 : i32
    %22 = arith.subi %c7_i32_10, %21 : i32
    %c0_i32_11 = arith.constant 0 : i32
    %c7_i32_12 = arith.constant 7 : i32
    %23 = arith.maxsi %c0_i32_11, %22 : i32
    %24 = arith.minsi %c7_i32_12, %23 : i32
    %25 = arith.index_cast %24 : i32 to index
    %c0_13 = arith.constant 0 : index
    %26 = vector.load %arg1[%25, %c0_13] : memref<15x32xf32, #tpu.memory_space<vmem>>, vector<8x32xf32>
    %27 = arith.index_cast %c2_i32 : i32 to index
    %c0_14 = arith.constant 0 : index
    %c0_15 = arith.constant 0 : index
    %28 = vector.load %arg2[%27, %c0_14, %c0_15] : memref<8x8x32xf32, #tpu.memory_space<vmem>>, vector<1x8x32xf32>
    %29 = vector.shape_cast %28 : vector<1x8x32xf32> to vector<8x32xf32>
    %30 = vector.shape_cast %26 : vector<8x32xf32> to vector<1x8x32xf32>
    tpu.vector_store %arg2[%27, %c0_14, %c0_15], %30 {strides = array<i32>} : memref<8x8x32xf32, #tpu.memory_space<vmem>>, vector<1x8x32xf32>,
    %c3_i32 = arith.constant 3 : i32
    %31 = arith.addi %0, %c3_i32 : i32
    %c7_i32_16 = arith.constant 7 : i32
    %32 = arith.subi %c7_i32_16, %31 : i32
    %c0_i32_17 = arith.constant 0 : i32
    %c7_i32_18 = arith.constant 7 : i32
    %33 = arith.maxsi %c0_i32_17, %32 : i32
    %34 = arith.minsi %c7_i32_18, %33 : i32
    %35 = arith.index_cast %34 : i32 to index
    %c0_19 = arith.constant 0 : index
    %36 = vector.load %arg1[%35, %c0_19] : memref<15x32xf32, #tpu.memory_space<vmem>>, vector<8x32xf32>
    %37 = arith.index_cast %c3_i32 : i32 to index
    %c0_20 = arith.constant 0 : index
    %c0_21 = arith.constant 0 : index
    %38 = vector.load %arg2[%37, %c0_20, %c0_21] : memref<8x8x32xf32, #tpu.memory_space<vmem>>, vector<1x8x32xf32>
    %39 = vector.shape_cast %38 : vector<1x8x32xf32> to vector<8x32xf32>
    %40 = vector.shape_cast %36 : vector<8x32xf32> to vector<1x8x32xf32>
    tpu.vector_store %arg2[%37, %c0_20, %c0_21], %40 {strides = array<i32>} : memref<8x8x32xf32, #tpu.memory_space<vmem>>, vector<1x8x32xf32>,
    %c4_i32 = arith.constant 4 : i32
    %41 = arith.addi %0, %c4_i32 : i32
    %c7_i32_22 = arith.constant 7 : i32
    %42 = arith.subi %c7_i32_22, %41 : i32
    %c0_i32_23 = arith.constant 0 : i32
    %c7_i32_24 = arith.constant 7 : i32
    %43 = arith.maxsi %c0_i32_23, %42 : i32
    %44 = arith.minsi %c7_i32_24, %43 : i32
    %45 = arith.index_cast %44 : i32 to index
    %c0_25 = arith.constant 0 : index
    %46 = vector.load %arg1[%45, %c0_25] : memref<15x32xf32, #tpu.memory_space<vmem>>, vector<8x32xf32>
    %47 = arith.index_cast %c4_i32 : i32 to index
    %c0_26 = arith.constant 0 : index
    %c0_27 = arith.constant 0 : index
    %48 = vector.load %arg2[%47, %c0_26, %c0_27] : memref<8x8x32xf32, #tpu.memory_space<vmem>>, vector<1x8x32xf32>
    %49 = vector.shape_cast %48 : vector<1x8x32xf32> to vector<8x32xf32>
    %50 = vector.shape_cast %46 : vector<8x32xf32> to vector<1x8x32xf32>
    tpu.vector_store %arg2[%47, %c0_26, %c0_27], %50 {strides = array<i32>} : memref<8x8x32xf32, #tpu.memory_space<vmem>>, vector<1x8x32xf32>,
    %c5_i32 = arith.constant 5 : i32
    %51 = arith.addi %0, %c5_i32 : i32
    %c7_i32_28 = arith.constant 7 : i32
    %52 = arith.subi %c7_i32_28, %51 : i32
    %c0_i32_29 = arith.constant 0 : i32
    %c7_i32_30 = arith.constant 7 : i32
    %53 = arith.maxsi %c0_i32_29, %52 : i32
    %54 = arith.minsi %c7_i32_30, %53 : i32
    %55 = arith.index_cast %54 : i32 to index
    %c0_31 = arith.constant 0 : index
    %56 = vector.load %arg1[%55, %c0_31] : memref<15x32xf32, #tpu.memory_space<vmem>>, vector<8x32xf32>
    %57 = arith.index_cast %c5_i32 : i32 to index
    %c0_32 = arith.constant 0 : index
    %c0_33 = arith.constant 0 : index
    %58 = vector.load %arg2[%57, %c0_32, %c0_33] : memref<8x8x32xf32, #tpu.memory_space<vmem>>, vector<1x8x32xf32>
    %59 = vector.shape_cast %58 : vector<1x8x32xf32> to vector<8x32xf32>
    %60 = vector.shape_cast %56 : vector<8x32xf32> to vector<1x8x32xf32>
    tpu.vector_store %arg2[%57, %c0_32, %c0_33], %60 {strides = array<i32>} : memref<8x8x32xf32, #tpu.memory_space<vmem>>, vector<1x8x32xf32>,
    %c6_i32 = arith.constant 6 : i32
    %61 = arith.addi %0, %c6_i32 : i32
    %c7_i32_34 = arith.constant 7 : i32
    %62 = arith.subi %c7_i32_34, %61 : i32
    %c0_i32_35 = arith.constant 0 : i32
    %c7_i32_36 = arith.constant 7 : i32
    %63 = arith.maxsi %c0_i32_35, %62 : i32
    %64 = arith.minsi %c7_i32_36, %63 : i32
    %65 = arith.index_cast %64 : i32 to index
    %c0_37 = arith.constant 0 : index
    %66 = vector.load %arg1[%65, %c0_37] : memref<15x32xf32, #tpu.memory_space<vmem>>, vector<8x32xf32>
    %67 = arith.index_cast %c6_i32 : i32 to index
    %c0_38 = arith.constant 0 : index
    %c0_39 = arith.constant 0 : index
    %68 = vector.load %arg2[%67, %c0_38, %c0_39] : memref<8x8x32xf32, #tpu.memory_space<vmem>>, vector<1x8x32xf32>
    %69 = vector.shape_cast %68 : vector<1x8x32xf32> to vector<8x32xf32>
    %70 = vector.shape_cast %66 : vector<8x32xf32> to vector<1x8x32xf32>
    tpu.vector_store %arg2[%67, %c0_38, %c0_39], %70 {strides = array<i32>} : memref<8x8x32xf32, #tpu.memory_space<vmem>>, vector<1x8x32xf32>,
    %c7_i32_40 = arith.constant 7 : i32
    %71 = arith.addi %0, %c7_i32_40 : i32
    %c7_i32_41 = arith.constant 7 : i32
    %72 = arith.subi %c7_i32_41, %71 : i32
    %c0_i32_42 = arith.constant 0 : i32
    %c7_i32_43 = arith.constant 7 : i32
    %73 = arith.maxsi %c0_i32_42, %72 : i32
    %74 = arith.minsi %c7_i32_43, %73 : i32
    %75 = arith.index_cast %74 : i32 to index
    %c0_44 = arith.constant 0 : index
    %76 = vector.load %arg1[%75, %c0_44] : memref<15x32xf32, #tpu.memory_space<vmem>>, vector<8x32xf32>
    %77 = arith.index_cast %c7_i32_40 : i32 to index
    %c0_45 = arith.constant 0 : index
    %c0_46 = arith.constant 0 : index
    %78 = vector.load %arg2[%77, %c0_45, %c0_46] : memref<8x8x32xf32, #tpu.memory_space<vmem>>, vector<1x8x32xf32>
    %79 = vector.shape_cast %78 : vector<1x8x32xf32> to vector<8x32xf32>
    %80 = vector.shape_cast %76 : vector<8x32xf32> to vector<1x8x32xf32>
    tpu.vector_store %arg2[%77, %c0_45, %c0_46], %80 {strides = array<i32>} : memref<8x8x32xf32, #tpu.memory_space<vmem>>, vector<1x8x32xf32>,
    %c8_i32_47 = arith.constant 8 : i32
    return
  }
  func.func @transform_0(%arg0: i32) -> (i32, i32) {
    %c0_i32 = arith.constant 0 : i32
    %c0_i32_0 = arith.constant 0 : i32
    %c0_i32_1 = arith.constant 0 : i32
    return %c0_i32, %c0_i32_0 : i32, i32
  }
  func.func @transform_1(%arg0: i32) -> (i32, i32, i32) {
    %c0_i32 = arith.constant 0 : i32
    %c0_i32_0 = arith.constant 0 : i32
    %c0_i32_1 = arith.constant 0 : i32
    return %arg0, %c0_i32, %c0_i32_0 : i32, i32, i32
  }
}

</mosaic_0001>

<bundles_post_ra>
// kernel: tpu_custom_call.1
= control target key start
LH: loop header
LB: loop body
LE: loop exit
PB: predicated region body
PF: predicated region fallthrough
CT: control target
= control target key end

     0   :  { %6 = vsyncpa [#allocation3], 0  ;;  %s225_s0 = inlined_call_operand.hbm [shape: f32[15,32], index: 0, kind: input, shape index: {}]   ;;  %s226_s1 = inlined_call_operand.hbm [shape: f32[8,8,32], index: 1, kind: output, shape index: {}]  }
   0x1   :  { %7 = vsyncpa [#allocation4], 0  ;;  %s173_s6 = smov [#allocation2]   ;;  %s125_s10 = scalar_lea.hbm %s225_s0, 256 }
   0x2   :  { %s13_s7 = sshll.u32 %s173_s6, 4  ;;  %p126_p0 = scmp.ne.s32.totalorder %s225_s0, %s125_s10  ;;  %s14_s7 = int_to_ptr.vmem [resolvable:$true] %s13_s7 }
   0x3   :  { %p129_p1 = scmp.lt.u32.totalorder %s125_s10, %s225_s0 }
   0x5   :  { %p131_p2 = pnand %p129_p1, %p126_p0 }
   0x7   :  { %134 = shalt.err (!%p131_p2)
}
   0x8   :  { %s135_s15 = scalar_lea.vmem %s14_s7, 256  ;;  %p140_p4 = scmp.lt.s32.totalorder %s14_s7, %s14_s7 }
   0x9   :  { %p136_p3 = scmp.ne.s32.totalorder %s14_s7, %s135_s15  ;;  %p141_p5 = scmp.lt.s32.totalorder %s135_s15, %s135_s15 }
   0xb   :  { %p142_p6 = por %p141_p5, %p140_p4 }
   0xd   :  { %p143_p7 = pnand %p142_p6, %p136_p3 }
   0xf   :  { %146 = shalt.err (!%p143_p7)
}
  0x10   :  { %s174_s16 = smov 128   ;;  %s175_s17 = smov 8  }
  0x11   :  { %19 = dma.hbm_to_vmem [thread:$0]  %s225_s0, 256, %s14_s7, [#allocation3], %s174_s16, %s174_s16, %s175_s17  }
  0x12   :  { %169 = dma.done.wait [#allocation3], 256  }
  0x13   :  { %170 = vsyncadd [#allocation3], 4294967040  ;;  %vm31_vm0 = vcmask 261120   ;;  %s176_s20 = smov [#allocation5]   ;;  %v30_v0 = vld [vmem:[#allocation2 + $0x7] sm:$0xff] }
  0x14   :  { %s101_s21 = sshll.u32 %s176_s20, 4  ;;  %v39_v1 = vld [vmem:[#allocation2 + $0x6] sm:$0xff]  ;;  %32 = vst.msk [vmem:[#allocation5] sm:$0xff] %vm31_vm0, %v30_v0  ;;  %s102_s21 = int_to_ptr.vmem [resolvable:$true] %s101_s21 }
  0x15   :  { %v48_v2 = vld [vmem:[#allocation2 + $0x5] sm:$0xff]  ;;  %41 = vst.msk [vmem:[#allocation5 + $0x8] sm:$0xff] %vm31_vm0, %v39_v1  ;;  %s147_s0 = scalar_lea.vmem %s102_s21, 1024  ;;  %p152_p9 = scmp.lt.s32.totalorder %s102_s21, %s102_s21 }
  0x16   :  { %50 = vst.msk [vmem:[#allocation5 + $0x10] sm:$0xff] %vm31_vm0, %v48_v2  ;;  %v57_v3 = vld [vmem:[#allocation2 + $0x4] sm:$0xff]  ;;  %p148_p8 = scmp.ne.s32.totalorder %s102_s21, %s147_s0  ;;  %p153_p10 = scmp.lt.s32.totalorder %s147_s0, %s147_s0 }
  0x17   :  { %v66_v4 = vld [vmem:[#allocation2 + $0x3] sm:$0xff]  ;;  %59 = vst.msk [vmem:[#allocation5 + $0x18] sm:$0xff] %vm31_vm0, %v57_v3 }
  0x18   :  { %v75_v5 = vld [vmem:[#allocation2 + $0x2] sm:$0xff]  ;;  %68 = vst.msk [vmem:[#allocation5 + $0x20] sm:$0xff] %vm31_vm0, %v66_v4  ;;  %p154_p11 = por %p153_p10, %p152_p9 }
  0x19   :  { %77 = vst.msk [vmem:[#allocation5 + $0x28] sm:$0xff] %vm31_vm0, %v75_v5  ;;  %v84_v6 = vld [vmem:[#allocation2 + $0x1] sm:$0xff] }
  0x1a   :  { %v93_v7 = vld [vmem:[#allocation2] sm:$0xff]  ;;  %86 = vst.msk [vmem:[#allocation5 + $0x30] sm:$0xff] %vm31_vm0, %v84_v6  ;;  %p155_p12 = pnand %p154_p11, %p148_p8 }
  0x1b   :  { %95 = vst.msk [vmem:[#allocation5 + $0x38] sm:$0xff] %vm31_vm0, %v93_v7 }
  0x1c   :  { %158 = shalt.err (!%p155_p12)
}
  0x1d   :  { %s159_s24 = scalar_lea.hbm %s226_s1, 1024 }
  0x1e   :  { %p160_p13 = scmp.ne.s32.totalorder %s226_s1, %s159_s24  ;;  %p163_p0 = scmp.lt.u32.totalorder %s159_s24, %s226_s1 }
  0x20   :  { %p165_p1 = pnand %p163_p0, %p160_p13 }
  0x22   :  { %168 = shalt.err (!%p165_p1)
}
  0x23   :  { %107 = dma.vmem_to_hbm [thread:$0]  %s102_s21, 1024, %s226_s1, [#allocation4], %s174_s16, %s174_s16, %s175_s17  }
  0x24   :  { %171 = dma.done.wait [#allocation4], 1024  }
  0x25   :  { %172 = vsyncadd [#allocation4], 4294966272 }
  0x26   :  { %111 = vsyncpa [#allocation3], 1 }
  0x27   :  { %112 = vsyncpa [#allocation4], 1 }

</bundles_post_ra>
